<compile_context>
chip_gen: v5e
topology: v5e:2x2
jax: 0.10.0
libtpu: 0.0.40
codegen_flags: <defaults>
</compile_context>

<pallas_src>
import functools

import jax
import jax.numpy as jnp
from jax.experimental import pallas as pl
from jax.experimental.pallas import tpu as pltpu


def _round_up(x, m):
    return ((x + m - 1) // m) * m


def _sccf_partial_kernel(sim_ref, w_ref, out_ref, *,
                         adv, temp, subsamp, n_neg, batch, tile_rows, skip_max):
    pid = pl.program_id(0)

    sim = sim_ref[...].astype(jnp.float32)          # (TB, C) lane-dense tile
    w = w_ref[...].astype(jnp.float32)              # (TB, 1)
    tb, c = sim.shape

    col = jax.lax.broadcasted_iota(jnp.int32, (tb, c), dimension=1)
    is_neg = col > 0                                # column 0 = positive score
    row = jax.lax.broadcasted_iota(jnp.int32, (tb, 1), dimension=0)
    row_valid = (row + pid * tile_rows) < batch     # tail-block guard

    # Tail-block rows are undefined (no wrapper padding): force them to a
    # log/exp-safe constant before any transcendental work (NaN*0 protection).
    sim = jnp.where(row_valid, sim, jnp.float32(1.0))

    # ---- positive term: masked lane-reduce extracts column 0, then a single
    # log on the (TB,1) vector (EUP work = TB, not TB*C).
    p = jnp.sum(jnp.where(is_neg, 0.0, sim), axis=1, keepdims=True)   # (TB, 1)
    log_p = jnp.log(p)

    # ---- negative aggregation per row ----------------------------------------
    if adv:
        logits = sim if temp == 1.0 else sim * jnp.float32(temp)
        masked_logits = jnp.where(is_neg, logits, jnp.float32(-1e30))
        if skip_max:
            e = jnp.exp(masked_logits)              # positive col underflows to 0
        else:
            m = jnp.max(masked_logits, axis=1, keepdims=True)          # (TB, 1)
            e = jnp.exp(masked_logits - m)          # positive col underflows to 0
        denom = jnp.sum(e, axis=1, keepdims=True)                      # (TB, 1)
        num = jnp.sum(e * sim, axis=1, keepdims=True)                  # (TB, 1)
        n_agg = num / denom                         # fused softmax-weighted sum
    else:
        n_sum = jnp.sum(jnp.where(is_neg, sim, 0.0), axis=1, keepdims=True)
        n_agg = n_sum * jnp.float32(1.0 / n_neg)    # divide by true N_neg

    # ---- effective per-row weight (subsampling weight or 1); 0 on tail rows --
    w_eff = w if subsamp else jnp.ones_like(w)
    w_eff = jnp.where(row_valid, w_eff, 0.0)

    s_logp = jnp.sum(w_eff * log_p)
    s_neg = jnp.sum(w_eff * n_agg)
    s_w = jnp.sum(w_eff)

    # ---- emit per-tile partials as a lane-dense (8, 128) slab ----------------
    sub = jax.lax.broadcasted_iota(jnp.int32, (8, 128), dimension=0)
    lane = jax.lax.broadcasted_iota(jnp.int32, (8, 128), dimension=1)
    row0 = sub == 0
    vals = jnp.where(row0 & (lane == 0), s_logp, 0.0)
    vals = jnp.where(row0 & (lane == 1), s_neg, vals)
    vals = jnp.where(row0 & (lane == 2), s_w, vals)
    out_ref[...] = vals


def sccf_loss(similarity, subsampling_weight, *,
              negative_adversarial_sampling=True,
              adversarial_temperature=1.0,
              subsampling=True,
              assume_bounded_scores=False):
    """Pallas implementation of SCCF_loss.forward. Returns (loss, loss_record).

    loss_record values are device scalars (jittable); call float() on them
    outside the hot path if Python floats are needed.
    """
    B, C = similarity.shape
    w2d = subsampling_weight.reshape(-1, 1)          # native dtype; cast in-kernel

    itemsize = jnp.dtype(similarity.dtype).itemsize
    # Sublane packing granularity for the row tile (bf16/fp16 pack 16, int8 32).
    row_gran = 8 if itemsize >= 4 else (16 if itemsize == 2 else 32)

    # Per-generation VMEM capacity (v7x: 64 MiB, v5e/v6e: 128 MiB).
    try:
        info = pltpu.get_tpu_info()
        cap = int(getattr(info, "vmem_capacity_bytes", 64 * 1024 * 1024))
    except Exception:  # conservative (v7x-sized) fallback
        cap = 64 * 1024 * 1024

    # Row tile: target ~4 MiB of f32 similarity per grid step, clamped so the
    # double-buffered input + f32 temporaries fit comfortably in half of VMEM.
    bytes_per_row_f32 = C * 4
    tb = (4 * 1024 * 1024) // bytes_per_row_f32
    tb = min(tb, (cap // 2) // max(1, 6 * bytes_per_row_f32))
    tb = max(row_gran, (tb // row_gran) * row_gran)
    tb = min(tb, _round_up(B, row_gran))
    num_tiles = -(-B // tb)

    kernel = functools.partial(
        _sccf_partial_kernel,
        adv=bool(negative_adversarial_sampling),
        temp=float(adversarial_temperature),
        subsamp=bool(subsampling),
        n_neg=C - 1,
        batch=B,
        tile_rows=tb,
        skip_max=bool(assume_bounded_scores),
    )

    # VMEM limit from actual buffer sizes: 2x double-buffered native-dtype tile
    # + f32 temporaries + weights + slack; clamped below physical capacity.
    tile_in_bytes = tb * C * itemsize
    tile_f32_bytes = tb * C * 4
    need = 2 * tile_in_bytes + 4 * tile_f32_bytes + 4 * tb * 4 + (2 << 20)
    vmem_limit = int(min(max(need, 16 * 1024 * 1024), (cap * 3) // 4))

    partials = pl.pallas_call(
        kernel,
        out_shape=jax.ShapeDtypeStruct((num_tiles * 8, 128), jnp.float32),
        grid_spec=pltpu.PrefetchScalarGridSpec(
            num_scalar_prefetch=0,
            grid=(num_tiles,),
            in_specs=[
                pl.BlockSpec((tb, C), lambda i: (i, 0)),   # similarity tile
                pl.BlockSpec((tb, 1), lambda i: (i, 0)),   # weight tile
            ],
            out_specs=pl.BlockSpec((8, 128), lambda i: (i, 0)),  # per-tile partials
        ),
        compiler_params=pltpu.CompilerParams(
            dimension_semantics=("parallel",),   # independent per-tile partials
            vmem_limit_bytes=vmem_limit,
        ),
    )(similarity, w2d)

    # Tiny finalize in the wrapper (3 scalars).
    sums = jnp.sum(partials, axis=0)                 # (128,)
    s_logp, s_neg, s_w = sums[0], sums[1], sums[2]
    pos_loss = -(s_logp / s_w)
    neg_loss = jnp.log(s_neg / s_w)
    loss = (pos_loss + neg_loss) * jnp.float32(0.5)

    loss_record = {
        "hard_positive_sample_loss": pos_loss,
        "hard_negative_sample_loss": neg_loss,
        "hard_loss": loss,
    }
    return loss, loss_record


def _reference(similarity, subsampling_weight, *, adv, temp, subsamp):
    """Pure-JAX reference mirroring the PyTorch forward exactly."""
    p_score, n_score = similarity[:, 0], similarity[:, 1:]
    log_p = jnp.log(p_score)
    if adv:
        n_agg = jnp.sum(jax.nn.softmax(n_score * temp, axis=1) * n_score, axis=1)
    else:
        n_agg = jnp.mean(n_score, axis=-1)
    if subsamp:
        pos = -(jnp.sum(subsampling_weight * log_p) / jnp.sum(subsampling_weight))
        neg = jnp.log(jnp.sum(subsampling_weight * n_agg) / jnp.sum(subsampling_weight))
    else:
        pos = -jnp.mean(log_p)
        neg = jnp.log(jnp.mean(n_agg))
    return (pos + neg) / 2.0, pos, neg


if __name__ == "__main__":
    key = jax.random.PRNGKey(0)

    configs = [
        # (B, N_neg, adv, temp, subsampling)
        (8, 127, True, 1.0, True),     # tile == batch, adversarial + subsampling
        (13, 63, True, 0.5, False),    # ragged batch (tail block), temp != 1, plain mean
        (13, 63, False, 1.0, True),    # ragged batch, non-adversarial, subsampling
    ]

    ok = True
    for idx, (B, N_NEG, ADV, TEMP, SUBSAMP) in enumerate(configs):
        k1, k2 = jax.random.split(jax.random.fold_in(key, idx))
        # SCCF similarity scores are positive (cosine-exponential style).
        similarity = jax.random.uniform(k1, (B, 1 + N_NEG), dtype=jnp.float32,
                                        minval=0.1, maxval=1.0)
        subsampling_weight = jax.random.uniform(k2, (B,), dtype=jnp.float32,
                                                minval=0.5, maxval=2.0)

        loss, loss_record = sccf_loss(
            similarity, subsampling_weight,
            negative_adversarial_sampling=ADV,
            adversarial_temperature=TEMP,
            subsampling=SUBSAMP,
        )
        loss = jax.block_until_ready(loss)

        ref_loss, ref_pos, ref_neg = _reference(
            similarity, subsampling_weight, adv=ADV, temp=TEMP, subsamp=SUBSAMP)

        ok &= bool(jnp.allclose(loss, ref_loss, rtol=1e-5, atol=1e-5))
        ok &= abs(float(loss_record["hard_positive_sample_loss"]) - float(ref_pos)) < 1e-4
        ok &= abs(float(loss_record["hard_negative_sample_loss"]) - float(ref_neg)) < 1e-4
        assert ok, (idx, float(loss), float(ref_loss))

    print("KERNEL_OK")
</pallas_src>

<mosaic_0001>
module attributes {stable_mosaic.version = 11 : i64} {
  func.func @_sccf_partial_kernel(%arg0: i32, %arg1: memref<8x128xf32, #tpu.memory_space<vmem>>, %arg2: memref<8x1xf32, #tpu.memory_space<vmem>>, %arg3: memref<8x128xf32, #tpu.memory_space<vmem>>) attributes {dimension_semantics = [#tpu.dimension_semantics<parallel>], iteration_bounds = array<i64: 1>, scalar_prefetch = 0 : i64, scratch_operands = 0 : i64, tpu.core_type = #tpu.core_type<tc>, window_params = [{transform_indices = @transform_0, window_bounds = array<i64: 8, 128>}, {transform_indices = @transform_1, window_bounds = array<i64: 8, 1>}, {transform_indices = @transform_2, window_bounds = array<i64: 8, 128>}]} {
    %c0 = arith.constant 0 : index
    %c0_0 = arith.constant 0 : index
    %0 = vector.load %arg1[%c0, %c0_0] : memref<8x128xf32, #tpu.memory_space<vmem>>, vector<8x128xf32>
    %c0_1 = arith.constant 0 : index
    %c0_2 = arith.constant 0 : index
    %1 = vector.load %arg2[%c0_1, %c0_2] : memref<8x1xf32, #tpu.memory_space<vmem>>, vector<8x1xf32>
    %2 = tpu.iota {dimensions = array<i32: 1>} : vector<8x128xi32>
    %c0_i32 = arith.constant 0 : i32
    %3 = vector.broadcast %c0_i32 : i32 to vector<8x128xi32>
    %4 = arith.cmpi sgt, %2, %3 : vector<8x128xi32>
    %5 = tpu.iota {dimensions = array<i32: 0>} : vector<8x1xi32>
    %c8_i32 = arith.constant 8 : i32
    %6 = arith.muli %arg0, %c8_i32 : i32
    %7 = vector.broadcast %6 : i32 to vector<8x1xi32>
    %8 = arith.addi %5, %7 : vector<8x1xi32>
    %c8_i32_3 = arith.constant 8 : i32
    %9 = vector.broadcast %c8_i32_3 : i32 to vector<8x1xi32>
    %10 = arith.cmpi slt, %8, %9 : vector<8x1xi32>
    %cst = arith.constant 1.000000e+00 : f32
    %11 = vector.shape_cast %10 : vector<8x1xi1> to vector<8x1xi1>
    %12 = vector.broadcast %11 : vector<8x1xi1> to vector<8x128xi1>
    %13 = vector.broadcast %cst : f32 to vector<8x128xf32>
    %14 = arith.select %12, %0, %13 : vector<8x128xi1>, vector<8x128xf32>
    %cst_4 = arith.constant 0.000000e+00 : f32
    %15 = vector.broadcast %cst_4 : f32 to vector<8x128xf32>
    %16 = arith.select %4, %15, %14 : vector<8x128xi1>, vector<8x128xf32>
    %cst_5 = arith.constant dense<0.000000e+00> : vector<8xf32>
    %17 = vector.multi_reduction <add>, %16, %cst_5 [1] : vector<8x128xf32> to vector<8xf32>
    %18 = vector.shape_cast %17 : vector<8xf32> to vector<8x1xf32>
    %19 = math.log %18 : vector<8x1xf32>
    %cst_6 = arith.constant -1.000000e+30 : f32
    %20 = vector.broadcast %cst_6 : f32 to vector<8x128xf32>
    %21 = arith.select %4, %14, %20 : vector<8x128xi1>, vector<8x128xf32>
    %cst_7 = arith.constant dense<0xFF800000> : vector<8xf32>
    %22 = vector.multi_reduction <maximumf>, %21, %cst_7 [1] : vector<8x128xf32> to vector<8xf32>
    %23 = vector.shape_cast %22 : vector<8xf32> to vector<8x1xf32>
    %24 = vector.broadcast %23 : vector<8x1xf32> to vector<8x128xf32>
    %25 = arith.subf %21, %24 : vector<8x128xf32>
    %26 = math.exp %25 : vector<8x128xf32>
    %cst_8 = arith.constant dense<0.000000e+00> : vector<8xf32>
    %27 = vector.multi_reduction <add>, %26, %cst_8 [1] : vector<8x128xf32> to vector<8xf32>
    %28 = vector.shape_cast %27 : vector<8xf32> to vector<8x1xf32>
    %29 = arith.mulf %26, %14 : vector<8x128xf32>
    %cst_9 = arith.constant dense<0.000000e+00> : vector<8xf32>
    %30 = vector.multi_reduction <add>, %29, %cst_9 [1] : vector<8x128xf32> to vector<8xf32>
    %31 = vector.shape_cast %30 : vector<8xf32> to vector<8x1xf32>
    %32 = arith.divf %31, %28 : vector<8x1xf32>
    %cst_10 = arith.constant 0.000000e+00 : f32
    %33 = vector.broadcast %cst_10 : f32 to vector<8x1xf32>
    %34 = arith.select %10, %1, %33 : vector<8x1xi1>, vector<8x1xf32>
    %35 = arith.mulf %34, %19 : vector<8x1xf32>
    %36 = vector.shape_cast %35 : vector<8x1xf32> to vector<1x8x1xf32>
    %cst_11 = arith.constant dense<0.000000e+00> : vector<1xf32>
    %37 = vector.multi_reduction <add>, %36, %cst_11 [1, 2] : vector<1x8x1xf32> to vector<1xf32>
    %38 = vector.shape_cast %37 : vector<1xf32> to vector<1x1x1xf32>
    %39 = vector.extract %38[0, 0, 0] : f32 from vector<1x1x1xf32>
    %40 = arith.mulf %34, %32 : vector<8x1xf32>
    %41 = vector.shape_cast %40 : vector<8x1xf32> to vector<1x8x1xf32>
    %cst_12 = arith.constant dense<0.000000e+00> : vector<1xf32>
    %42 = vector.multi_reduction <add>, %41, %cst_12 [1, 2] : vector<1x8x1xf32> to vector<1xf32>
    %43 = vector.shape_cast %42 : vector<1xf32> to vector<1x1x1xf32>
    %44 = vector.extract %43[0, 0, 0] : f32 from vector<1x1x1xf32>
    %45 = vector.shape_cast %34 : vector<8x1xf32> to vector<1x8x1xf32>
    %cst_13 = arith.constant dense<0.000000e+00> : vector<1xf32>
    %46 = vector.multi_reduction <add>, %45, %cst_13 [1, 2] : vector<1x8x1xf32> to vector<1xf32>
    %47 = vector.shape_cast %46 : vector<1xf32> to vector<1x1x1xf32>
    %48 = vector.extract %47[0, 0, 0] : f32 from vector<1x1x1xf32>
    %49 = tpu.iota {dimensions = array<i32: 0>} : vector<8x128xi32>
    %50 = tpu.iota {dimensions = array<i32: 1>} : vector<8x128xi32>
    %c0_i32_14 = arith.constant 0 : i32
    %51 = vector.broadcast %c0_i32_14 : i32 to vector<8x128xi32>
    %52 = arith.cmpi eq, %49, %51 : vector<8x128xi32>
    %c0_i32_15 = arith.constant 0 : i32
    %53 = vector.broadcast %c0_i32_15 : i32 to vector<8x128xi32>
    %54 = arith.cmpi eq, %50, %53 : vector<8x128xi32>
    %55 = arith.andi %52, %54 : vector<8x128xi1>
    %cst_16 = arith.constant 0.000000e+00 : f32
    %56 = vector.broadcast %39 : f32 to vector<8x128xf32>
    %57 = vector.broadcast %cst_16 : f32 to vector<8x128xf32>
    %58 = arith.select %55, %56, %57 : vector<8x128xi1>, vector<8x128xf32>
    %c1_i32 = arith.constant 1 : i32
    %59 = vector.broadcast %c1_i32 : i32 to vector<8x128xi32>
    %60 = arith.cmpi eq, %50, %59 : vector<8x128xi32>
    %61 = arith.andi %52, %60 : vector<8x128xi1>
    %62 = vector.broadcast %44 : f32 to vector<8x128xf32>
    %63 = arith.select %61, %62, %58 : vector<8x128xi1>, vector<8x128xf32>
    %c2_i32 = arith.constant 2 : i32
    %64 = vector.broadcast %c2_i32 : i32 to vector<8x128xi32>
    %65 = arith.cmpi eq, %50, %64 : vector<8x128xi32>
    %66 = arith.andi %52, %65 : vector<8x128xi1>
    %67 = vector.broadcast %48 : f32 to vector<8x128xf32>
    %68 = arith.select %66, %67, %63 : vector<8x128xi1>, vector<8x128xf32>
    %c0_17 = arith.constant 0 : index
    %c0_18 = arith.constant 0 : index
    %69 = vector.load %arg3[%c0_17, %c0_18] : memref<8x128xf32, #tpu.memory_space<vmem>>, vector<8x128xf32>
    tpu.vector_store %arg3[%c0_17, %c0_18], %68 {strides = array<i32>} : memref<8x128xf32, #tpu.memory_space<vmem>>, vector<8x128xf32>,
    return
  }
  func.func @transform_0(%arg0: i32) -> (i32, i32) {
    %c0_i32 = arith.constant 0 : i32
    %c0_i32_0 = arith.constant 0 : i32
    return %arg0, %c0_i32 : i32, i32
  }
  func.func @transform_1(%arg0: i32) -> (i32, i32) {
    %c0_i32 = arith.constant 0 : i32
    %c0_i32_0 = arith.constant 0 : i32
    return %arg0, %c0_i32 : i32, i32
  }
  func.func @transform_2(%arg0: i32) -> (i32, i32) {
    %c0_i32 = arith.constant 0 : i32
    %c0_i32_0 = arith.constant 0 : i32
    return %arg0, %c0_i32 : i32, i32
  }
}

</mosaic_0001>

<bundles_post_ra>
// kernel: tpu_custom_call.1
= control target key start
LH: loop header
LB: loop body
LE: loop exit
PB: predicated region body
PF: predicated region fallthrough
CT: control target
= control target key end

     0   :  { %v14_v0 = vlaneseq  ;;  %s196_s0 = inlined_call_operand.vmem [shape: f32[8,128], index: 0, kind: input, shape index: {}]   ;;  %s197_s1 = inlined_call_operand.vmem [shape: f32[8,1], index: 1, kind: input, shape index: {}]   ;;  %s198_s2 = inlined_call_operand.hbm [shape: f32[8,128], index: 2, kind: output, shape index: {}]  }
   0x1   :  { %7 = vsyncpa [#allocation3], 0  ;;  %v12_v1 = vld [vmem:[%s196_s0] sm:$0xff]  ;;  %vm59_vm1 = vcmask 7168   ;;  %s160_s12 = smov [#allocation2]   ;;  %s112_s16 = sshll.u32 %s198_s2, 4  ;;  %s113_s16 = int_to_ptr.hbm [resolvable:$true] %s112_s16 }
   0x2   :  { %v180_v2 = vand.u32 127, %v14_v0  ;;  %v13_v13 = vld [vmem:[%s197_s1] sm:$0xff]  ;;  %v18_v53 = vshrl.u32 %v14_v0, 7  ;;  %s110_s13 = sshll.u32 %s160_s12, 4  ;;  %s111_s13 = int_to_ptr.vmem [resolvable:$true] %s110_s13 }
   0x3   :  { %v81_v16 = vsel %vm59_vm1, %v13_v13, 0.0 }
   0x4   :  { %vm16_vm0 = vcmp.gt.s32.totalorder %v180_v2, 0  ;;  %vm91_vm6 = vcmp.eq.s32.totalorder %v18_v53, 0  ;;  %vm92_vm7 = vcmp.eq.s32.totalorder %v180_v2, 0  ;;  %vm96_vm8 = vcmp.eq.s32.totalorder %v180_v2, 1 }
   0x5   :  { %v31_v3 = vsel %vm16_vm0, %v12_v1, -1e+30  ;;  %v26_v4 = vsel %vm16_vm0, 0.0, %v12_v1  ;;  %vm100_vm9 = vcmp.eq.s32.totalorder %v180_v2, 2  ;;  %vm93_vm10 = vmand %vm91_vm6, %vm92_vm7 }
   0x6   :  { %32 = vmax.xlane.f32.xlu0 %v31_v3  ;;  %27 = vadd.xlane.f32.xlu1 %v26_v4  ;;  %vm97_vm11 = vmand %vm91_vm6, %vm96_vm8 }
   0x7   :  { %vm101_vm12 = vmand %vm91_vm6, %vm100_vm9 }
  0x79   :  { %v33_v5 = vpop.xlane.xlu0 %32  ;;  %v28_v10 = vpop.xlane.xlu1 %27 }
  0x7a   :  { %v34_v6 = vsub.f32 %v31_v3, %v33_v5 }
  0x7c   :  { %v35_v7 = vmul.f32 1.442695, %v34_v6 }
  0x7e   :  { %128 = vpow2.f32 %v35_v7 }
  0x7f   :  { %130 = vlog2.f32 %v28_v10 }
  0x84   :  { %v129_v8 = vpop.eup %128 }
  0x85   :  { %37 = vadd.xlane.f32.xlu0 %v129_v8  ;;  %v39_v9 = vmul.f32 %v129_v8, %v12_v1  ;;  %v131_v11 = vpop.eup %130 }
  0x86   :  { %v30_v12 = vmul.f32 0.6931472, %v131_v11 }
  0x87   :  { %40 = vadd.xlane.f32.xlu1 %v39_v9 }
  0x88   :  { %v58_v14 = vmul.f32 %v30_v12, %v13_v13 }
  0x8a   :  { %v60_v15 = vsel %vm59_vm1, %v58_v14, 0.0 }
  0x8b   :  { %61 = vadd.xlane.f32.xlu2 %v60_v15 }
  0x8d   :  { %82 = vadd.xlane.f32.xlu0 %v81_v16 }
  0xf8   :  { %v38_v17 = vpop.xlane.xlu0 %37 }
  0xf9   :  { %132 = vrcp.f32 %v38_v17  ;;  %v53_v21 = vand.u32 2147483648, %v38_v17  ;;  %v51_v23 = vand.u32 2147483647, %v38_v17  ;;  %vm47_vm3 = vweird.f32 %v38_v17 }
  0xfa   :  { %v41_v28 = vpop.xlane.xlu1 %40 }
  0xfb   :  { %v54_v25 = vor.u32 1.1754944e-38, %v53_v21  ;;  %vm52_vm5 = vcmp.eq.f32.partialorder %v51_v23, 8.507059e+37 }
  0xfe   :  { %v62_v32 = vpop.xlane.xlu2 %61 }
  0xff   :  { %v133_v18 = vpop.eup %132  ;;  %v63_v33 = vrot.slane %v62_v32, 4 }
 0x100   :  { %v43_v19 = vmul.f32 %v133_v18, %v38_v17  ;;  %vm48_vm2 = vweird.f32 %v133_v18  ;;  %v83_v39 = vpop.xlane.xlu0 %82 }
 0x101   :  { %vm49_vm4 = vmor %vm47_vm3, %vm48_vm2  ;;  %v64_v34 = vadd.f32 %v63_v33, %v62_v32  ;;  %v84_v40 = vrot.slane %v83_v39, 4 }
 0x102   :  { %v44_v20 = vsub.f32 1.0, %v43_v19 }
 0x103   :  { %v65_v35 = vrot.slane %v64_v34, 2  ;;  %v85_v41 = vadd.f32 %v84_v40, %v83_v39 }
 0x104   :  { %v45_v22 = vmul.f32 %v133_v18, %v44_v20 }
 0x105   :  { %v66_v36 = vadd.f32 %v65_v35, %v64_v34  ;;  %v86_v42 = vrot.slane %v85_v41, 2 }
 0x106   :  { %v46_v24 = vadd.f32 %v133_v18, %v45_v22 }
 0x107   :  { %v67_v37 = vrot.slane %v66_v36, 1  ;;  %v87_v46 = vadd.f32 %v86_v42, %v85_v41 }
 0x108   :  { %v50_v26 = vsel %vm49_vm4, %v133_v18, %v46_v24 }
 0x109   :  { %v55_v27 = vsel %vm52_vm5, %v54_v25, %v50_v26  ;;  %v68_v38 = vadd.f32 %v67_v37, %v66_v36  ;;  %v88_v49 = vrot.slane %v87_v46, 1 }
 0x10a   :  { %v56_v29 = vmul.f32 %v55_v27, %v41_v28 }
 0x10b   :  { %121 = vpush %v68_v38  ;;  %v89_v52 = vadd.f32 %v88_v49, %v87_v46 }
 0x10c   :  { %v70_v30 = vmul.f32 %v56_v29, %v13_v13 }
 0x10e   :  { %v71_v31 = vsel %vm59_vm1, %v70_v30, 0.0 }
 0x10f   :  { %72 = vadd.xlane.f32.xlu2 %v71_v31 }
 0x13c   :  { %s122_s1 = spop %121 }
 0x13d   :  { %v94_v54 = vstv %s122_s1 }
 0x13e   :  { %v95_v55 = vsel %vm93_vm10, %v94_v54, 0.0 }
 0x182   :  { %v73_v43 = vpop.xlane.xlu2 %72 }
 0x183   :  { %v74_v44 = vrot.slane %v73_v43, 4 }
 0x185   :  { %v75_v45 = vadd.f32 %v74_v44, %v73_v43 }
 0x187   :  { %v76_v47 = vrot.slane %v75_v45, 2 }
 0x189   :  { %v77_v48 = vadd.f32 %v76_v47, %v75_v45 }
 0x18b   :  { %v78_v50 = vrot.slane %v77_v48, 1 }
 0x18d   :  { %v79_v51 = vadd.f32 %v78_v50, %v77_v48 }
 0x18f   :  { %123 = vpush %v79_v51 }
 0x190   :  { %125 = vpush %v89_v52 }
 0x1c0   :  { %s124_s17 = spop %123 }
 0x1c1   :  { %v98_v56 = vstv %s124_s17  ;;  %s126_s18 = spop %125 }
 0x1c2   :  { %v99_v57 = vsel %vm97_vm11, %v98_v56, %v95_v55  ;;  %v102_v58 = vstv %s126_s18 }
 0x1c3   :  { %v103_v59 = vsel %vm101_vm12, %v102_v58, %v99_v57 }
 0x1c4   :  { %104 = vst [vmem:[#allocation2] sm:$0xff] %v103_v59 }
 0x1c5   :  { %115 = dma.vmem_to_hbm [thread:$0]  %s111_s13, 128, %s113_s16, [#allocation3]  }
 0x1c6   :  { %158 = dma.done.wait [#allocation3], 128  }
 0x1c7   :  { %159 = vsyncadd [#allocation3], 4294967168 }
 0x1c8   :  { %120 = vsyncpa [#allocation3], 1 }

</bundles_post_ra>
